<compile_context>
chip_gen: v7x
topology: tpu7x:2x2x1
jax: 0.10.0
libtpu: 0.0.40
codegen_flags: <defaults>
</compile_context>

<pallas_src>
import jax
import jax.numpy as jnp
from jax.experimental import pallas as pl
from jax.experimental.pallas import tpu as pltpu

# ----------------------------- model config ---------------------------------
B = 2            # batch
S = 8            # sequence length (power of two -> shift-based batch ids)
H = 32           # hidden size (BERT hidden_size, scaled down)
FFN = 128        # intermediate size (4 * H)
OUT = 256        # fc output dim (Linear(hidden_size, 256))
VOCAB = 100
VOCAB_PAD = 128  # token table zero-padded so it can share an operand with w2
EPS = 1e-12      # BERT LayerNorm eps
BS = B * S
_LOG2_S = S.bit_length() - 1
assert (1 << _LOG2_S) == S, "S must be a power of two"
assert VOCAB <= VOCAB_PAD and FFN == VOCAB_PAD, "w_tok_w2 packing relies on this"

# rows of the packed `vecs` operand (lane width = OUT = 256, f32)
R_POS   = 0                 # rows [0, BS): position embedding pre-tiled to (B*S, H)
R_EMB_G = BS + 0
R_EMB_B = BS + 1
R_BQKV  = BS + 2
R_BO    = BS + 3
R_LN1_G = BS + 4
R_LN1_B = BS + 5
R_B1    = BS + 6
R_B2    = BS + 7
R_LN2_G = BS + 8
R_LN2_B = BS + 9
R_BFC   = BS + 10
N_VEC_ROWS = BS + 11

# lane offsets inside the packed `w_cat` operand (H rows, bf16)
C_WQKV = 0              # [0, 3H)
C_WO   = 3 * H          # [3H, 4H)
C_W1   = 4 * H          # [4H, 4H+FFN)
C_WFC  = 4 * H + FFN    # [4H+FFN, 4H+FFN+OUT)
N_WCAT_COLS = 4 * H + FFN + OUT

# 2-D dot_general dimension numbers (patterns used by the official TPU flash-attn kernels)
_NT = (((1,), (1,)), ((), ()))   # a @ b.T  (contract last dims)
_TN = (((0,), (0,)), ((), ()))   # a.T @ b  (contract first dims)


def _layernorm(z, gamma, beta):
    mean = jnp.mean(z, axis=-1, keepdims=True)
    var = jnp.mean((z - mean) ** 2, axis=-1, keepdims=True)
    return (z - mean) * jax.lax.rsqrt(var + EPS) * gamma + beta


# ------------------- single fused Pallas kernel ------------------------------
def fused_text_extractor_kernel(ids_ref, mask_ref, wtok2_ref, wcat_ref, vecs_ref, out_ref):
    f32, bf16 = jnp.float32, jnp.bfloat16
    wtok2 = wtok2_ref[...]                 # (VOCAB_PAD, 2H)   bf16: [tok_emb | w2]
    wcat = wcat_ref[...]                   # (H, 512)          bf16: [wqkv|wo|w1|w_fc]
    vecs = vecs_ref[...]                   # (BS+11, 256)      f32 packed vectors

    def vrow(r, w):                        # (1, w) f32 parameter row
        return vecs[r:r + 1, 0:w]

    # --- token embedding lookup: one-hot^T matmul on the MXU (gather-free) ----
    ids_row = ids_ref[...]                                         # (1, BS) int32, lane-dense
    vocab_iota = jax.lax.broadcasted_iota(jnp.int32, (VOCAB_PAD, BS), 0)
    onehot_t = (vocab_iota == ids_row).astype(bf16)                # sublane broadcast only
    emb = jax.lax.dot_general(onehot_t, wtok2[:, 0:H], _TN,
                              preferred_element_type=f32)          # (BS, H)
    emb = emb + vecs[R_POS:R_POS + BS, 0:H]                        # pre-tiled pos, plain VPU add
    x = _layernorm(emb, vrow(R_EMB_G, H), vrow(R_EMB_B, H))        # (BS, H) f32

    # --- fused QKV projection: one (BS,H) x (H,3H) bf16 matmul ----------------
    qkv = jnp.dot(x.astype(bf16), wcat[:, C_WQKV:C_WQKV + 3 * H],
                  preferred_element_type=f32) + vrow(R_BQKV, 3 * H)
    q = qkv[:, 0 * H:1 * H].astype(bf16)
    k = qkv[:, 1 * H:2 * H].astype(bf16)
    v = qkv[:, 2 * H:3 * H].astype(bf16)

    # --- flattened self-attention: 2-D MXU matmuls + block-diag / padding mask -
    scores = jax.lax.dot_general(q, k, _NT,
                                 preferred_element_type=f32) * (1.0 / float(H) ** 0.5)
    q_iota = jax.lax.broadcasted_iota(jnp.int32, (BS, BS), 0)
    k_iota = jax.lax.broadcasted_iota(jnp.int32, (BS, BS), 1)
    same_batch = (q_iota >> _LOG2_S) == (k_iota >> _LOG2_S)        # block-diagonal blocks
    keep = jnp.logical_and(same_batch, mask_ref[...] > 0)          # key padding mask (1,BS) bcast
    scores = jnp.where(keep, scores, -1e9)
    scores = scores - jnp.max(scores, axis=-1, keepdims=True)
    p = jnp.exp(scores)
    # approx=True: ~1e-4 rel. error vs exact softmax; use approx=False for parity tests.
    p = p * pl.reciprocal(jnp.sum(p, axis=-1, keepdims=True), approx=True)
    ctx = jnp.dot(p.astype(bf16), v, preferred_element_type=f32)   # (BS, H)

    attn = jnp.dot(ctx.astype(bf16), wcat[:, C_WO:C_WO + H],
                   preferred_element_type=f32) + vrow(R_BO, H)
    y = _layernorm(x + attn, vrow(R_LN1_G, H), vrow(R_LN1_B, H))   # (BS, H)

    # --- downstream is per-token: compute FFN/LN2/head only for the CLS rows --
    y_cls = y.reshape(B, S, H)[:, 0, :]                            # (B, H)
    h = jnp.dot(y_cls.astype(bf16), wcat[:, C_W1:C_W1 + FFN],
                preferred_element_type=f32) + vrow(R_B1, FFN)
    h = jax.nn.gelu(h)
    f = jnp.dot(h.astype(bf16), wtok2[:, H:2 * H],
                preferred_element_type=f32) + vrow(R_B2, H)
    z_cls = _layernorm(y_cls + f, vrow(R_LN2_G, H), vrow(R_LN2_B, H))

    # --- fc head: Linear(H, 256) + ReLU (Dropout(0.3) identity in eval) -------
    out = jnp.dot(z_cls.astype(bf16), wcat[:, C_WFC:C_WFC + OUT],
                  preferred_element_type=f32) + vrow(R_BFC, OUT)
    out_ref[...] = jnp.maximum(out, 0.0).astype(out_ref.dtype)     # (B, 256) lane-dense


def _full_spec(shape):
    nd = len(shape)
    return pl.BlockSpec(shape, lambda i, _nd=nd: (0,) * _nd)


def text_feature_extractor(input_ids, attention_mask, packed):
    ids = input_ids.astype(jnp.int32).reshape(1, BS)          # lane-dense token ids
    mask = attention_mask.astype(jnp.int32).reshape(1, BS)    # lane-dense key mask

    operands = (ids, mask, packed["w_tok_w2"], packed["w_cat"], packed["vecs"])
    in_specs = [_full_spec(op.shape) for op in operands]

    return pl.pallas_call(
        fused_text_extractor_kernel,
        out_shape=jax.ShapeDtypeStruct((B, OUT), jnp.float32),
        # single fused step; TODO(synk): add a leading "parallel" batch grid axis
        # if B grows (free headroom on v7x's 2 TensorCores, harmless on v5e/v6e).
        grid=(1,),
        in_specs=in_specs,
        out_specs=pl.BlockSpec((B, OUT), lambda i: (0, 0)),
        compiler_params=pltpu.CompilerParams(dimension_semantics=("arbitrary",)),
    )(*operands)


# ----------------------------- parameter init --------------------------------
def init_params(key):
    ks = jax.random.split(key, 16)
    n = lambda k, shp: (0.02 * jax.random.normal(k, shp)).astype(jnp.float32)
    wq, wk, wv = n(ks[2], (H, H)), n(ks[3], (H, H)), n(ks[4], (H, H))
    return {
        "tok_emb": n(ks[0], (VOCAB, H)),
        "pos_emb": n(ks[1], (S, H)),
        "emb_ln_g": jnp.ones((1, H), jnp.float32),
        "emb_ln_b": jnp.zeros((1, H), jnp.float32),
        "wqkv": jnp.concatenate([wq, wk, wv], axis=1),          # (H, 3H)
        "bqkv": jnp.zeros((1, 3 * H), jnp.float32),
        "wo": n(ks[5], (H, H)), "bo": jnp.zeros((1, H), jnp.float32),
        "ln1_g": jnp.ones((1, H), jnp.float32), "ln1_b": jnp.zeros((1, H), jnp.float32),
        "w1": n(ks[6], (H, FFN)), "b1": jnp.zeros((1, FFN), jnp.float32),
        "w2": n(ks[7], (FFN, H)), "b2": jnp.zeros((1, H), jnp.float32),
        "ln2_g": jnp.ones((1, H), jnp.float32), "ln2_b": jnp.zeros((1, H), jnp.float32),
        "w_fc": n(ks[8], (H, OUT)), "b_fc": jnp.zeros((1, OUT), jnp.float32),
    }


def pack_params(p):
    """One-time packing of the 20 logical parameters into 3 kernel operands."""
    def row(v):
        v = jnp.asarray(v, jnp.float32).reshape(1, -1)
        return jnp.pad(v, ((0, 0), (0, OUT - v.shape[-1])))

    pos_bs = jnp.tile(p["pos_emb"].astype(jnp.float32), (B, 1))              # (BS, H)
    vecs = jnp.concatenate(
        [jnp.pad(pos_bs, ((0, 0), (0, OUT - H)))]
        + [row(p[k]) for k in ("emb_ln_g", "emb_ln_b", "bqkv", "bo",
                               "ln1_g", "ln1_b", "b1", "b2",
                               "ln2_g", "ln2_b", "b_fc")],
        axis=0)                                                              # (BS+11, 256) f32
    assert vecs.shape == (N_VEC_ROWS, OUT)

    tok_pad = jnp.zeros((VOCAB_PAD, H), jnp.float32).at[:VOCAB, :].set(p["tok_emb"])
    w_tok_w2 = jnp.concatenate([tok_pad, p["w2"]], axis=1).astype(jnp.bfloat16)   # (128, 2H)
    w_cat = jnp.concatenate([p["wqkv"], p["wo"], p["w1"], p["w_fc"]],
                            axis=1).astype(jnp.bfloat16)                          # (H, 512)
    assert w_cat.shape == (H, N_WCAT_COLS)
    return {"vecs": vecs, "w_tok_w2": w_tok_w2, "w_cat": w_cat}


if __name__ == "__main__":
    key = jax.random.PRNGKey(0)
    k_param, k_ids = jax.random.split(key)
    params = init_params(k_param)
    packed = pack_params(params)      # done once, outside the per-call path

    input_ids = jax.random.randint(k_ids, (B, S), 0, VOCAB, dtype=jnp.int32)
    # attention_mask: first sequence fully attended, second has 2 padded tokens.
    attention_mask = jnp.array([[1] * S, [1] * (S - 2) + [0, 0]], dtype=jnp.int32)

    out = text_feature_extractor(input_ids, attention_mask, packed)
    out = jax.block_until_ready(out)
    assert out.shape == (B, OUT) and out.dtype == jnp.float32
    assert bool(jnp.all(jnp.isfinite(out)))
    print("KERNEL_OK")
</pallas_src>

<mosaic_0001>
module attributes {stable_mosaic.version = 11 : i64} {
  func.func @fused_text_extractor_kernel(%arg0: i32, %arg1: memref<1x16xi32, #tpu.memory_space<vmem>>, %arg2: memref<1x16xi32, #tpu.memory_space<vmem>>, %arg3: memref<128x64xbf16, #tpu.memory_space<vmem>>, %arg4: memref<32x512xbf16, #tpu.memory_space<vmem>>, %arg5: memref<27x256xf32, #tpu.memory_space<vmem>>, %arg6: memref<2x256xf32, #tpu.memory_space<vmem>>) attributes {dimension_semantics = [#tpu.dimension_semantics<arbitrary>], iteration_bounds = array<i64: 1>, scalar_prefetch = 0 : i64, scratch_operands = 0 : i64, tpu.core_type = #tpu.core_type<tc>, window_params = [{pipeline_mode = #tpu.pipeline_mode<synchronous>, transform_indices = @transform_0, window_bounds = array<i64: 1, 16>}, {pipeline_mode = #tpu.pipeline_mode<synchronous>, transform_indices = @transform_1, window_bounds = array<i64: 1, 16>}, {pipeline_mode = #tpu.pipeline_mode<synchronous>, transform_indices = @transform_2, window_bounds = array<i64: 128, 64>}, {pipeline_mode = #tpu.pipeline_mode<synchronous>, transform_indices = @transform_3, window_bounds = array<i64: 32, 512>}, {pipeline_mode = #tpu.pipeline_mode<synchronous>, transform_indices = @transform_4, window_bounds = array<i64: 27, 256>}, {pipeline_mode = #tpu.pipeline_mode<synchronous>, transform_indices = @transform_5, window_bounds = array<i64: 2, 256>}]} {
    %c0 = arith.constant 0 : index
    %c0_0 = arith.constant 0 : index
    %0 = vector.load %arg3[%c0, %c0_0] : memref<128x64xbf16, #tpu.memory_space<vmem>>, vector<128x64xbf16>
    %c0_1 = arith.constant 0 : index
    %c0_2 = arith.constant 0 : index
    %1 = vector.load %arg4[%c0_1, %c0_2] : memref<32x512xbf16, #tpu.memory_space<vmem>>, vector<32x512xbf16>
    %c0_3 = arith.constant 0 : index
    %c0_4 = arith.constant 0 : index
    %2 = vector.load %arg5[%c0_3, %c0_4] : memref<27x256xf32, #tpu.memory_space<vmem>>, vector<27x256xf32>
    %c0_5 = arith.constant 0 : index
    %c0_6 = arith.constant 0 : index
    %3 = vector.load %arg1[%c0_5, %c0_6] : memref<1x16xi32, #tpu.memory_space<vmem>>, vector<1x16xi32>
    %4 = tpu.iota {dimensions = array<i32: 0>} : vector<128x16xi32>
    %5 = vector.broadcast %3 : vector<1x16xi32> to vector<128x16xi32>
    %6 = arith.cmpi eq, %4, %5 : vector<128x16xi32>
    %7 = arith.extui %6 : vector<128x16xi1> to vector<128x16xi32>
    %8 = arith.sitofp %7 : vector<128x16xi32> to vector<128x16xf32>
    %9 = arith.truncf %8 : vector<128x16xf32> to vector<128x16xbf16>
    %10 = vector.extract_strided_slice %0 {offsets = [0, 0], sizes = [128, 32], strides = [1, 1]} : vector<128x64xbf16> to vector<128x32xbf16>
    %cst = arith.constant dense<0.000000e+00> : vector<16x32xf32>
    %11 = tpu.matmul %9, %10, %cst {dimension_numbers = #tpu.dot_dimension_numbers<[0], [0], [1], [1], [0, 1, 1, 1], [], []>} : vector<128x16xbf16>, vector<128x32xbf16>, vector<16x32xf32> -> vector<16x32xf32>
    %12 = vector.extract_strided_slice %2 {offsets = [0, 0], sizes = [16, 32], strides = [1, 1]} : vector<27x256xf32> to vector<16x32xf32>
    %13 = arith.addf %11, %12 : vector<16x32xf32>
    %14 = vector.extract_strided_slice %2 {offsets = [16, 0], sizes = [1, 32], strides = [1, 1]} : vector<27x256xf32> to vector<1x32xf32>
    %15 = vector.extract_strided_slice %2 {offsets = [17, 0], sizes = [1, 32], strides = [1, 1]} : vector<27x256xf32> to vector<1x32xf32>
    %cst_7 = arith.constant dense<0.000000e+00> : vector<16xf32>
    %16 = vector.multi_reduction <add>, %13, %cst_7 [1] : vector<16x32xf32> to vector<16xf32>
    %17 = vector.shape_cast %16 : vector<16xf32> to vector<16x1xf32>
    %cst_8 = arith.constant 3.200000e+01 : f32
    %18 = vector.broadcast %cst_8 : f32 to vector<16x1xf32>
    %19 = arith.divf %17, %18 : vector<16x1xf32>
    %20 = vector.broadcast %19 : vector<16x1xf32> to vector<16x32xf32>
    %21 = arith.subf %13, %20 : vector<16x32xf32>
    %22 = arith.mulf %21, %21 : vector<16x32xf32>
    %cst_9 = arith.constant dense<0.000000e+00> : vector<16xf32>
    %23 = vector.multi_reduction <add>, %22, %cst_9 [1] : vector<16x32xf32> to vector<16xf32>
    %24 = vector.shape_cast %23 : vector<16xf32> to vector<16x1xf32>
    %cst_10 = arith.constant 3.200000e+01 : f32
    %25 = vector.broadcast %cst_10 : f32 to vector<16x1xf32>
    %26 = arith.divf %24, %25 : vector<16x1xf32>
    %27 = vector.broadcast %19 : vector<16x1xf32> to vector<16x32xf32>
    %28 = arith.subf %13, %27 : vector<16x32xf32>
    %cst_11 = arith.constant 9.99999996E-13 : f32
    %29 = vector.broadcast %cst_11 : f32 to vector<16x1xf32>
    %30 = arith.addf %26, %29 : vector<16x1xf32>
    %31 = math.rsqrt %30 : vector<16x1xf32>
    %32 = vector.broadcast %31 : vector<16x1xf32> to vector<16x32xf32>
    %33 = arith.mulf %28, %32 : vector<16x32xf32>
    %34 = vector.broadcast %14 : vector<1x32xf32> to vector<16x32xf32>
    %35 = arith.mulf %33, %34 : vector<16x32xf32>
    %36 = vector.broadcast %15 : vector<1x32xf32> to vector<16x32xf32>
    %37 = arith.addf %35, %36 : vector<16x32xf32>
    %38 = arith.truncf %37 : vector<16x32xf32> to vector<16x32xbf16>
    %39 = vector.extract_strided_slice %1 {offsets = [0, 0], sizes = [32, 96], strides = [1, 1]} : vector<32x512xbf16> to vector<32x96xbf16>
    %cst_12 = arith.constant dense<0.000000e+00> : vector<16x96xf32>
    %40 = tpu.matmul %38, %39, %cst_12 {dimension_numbers = #tpu.dot_dimension_numbers<[1], [0], [0], [1], [0, 0, 1, 1], [], []>} : vector<16x32xbf16>, vector<32x96xbf16>, vector<16x96xf32> -> vector<16x96xf32>
    %41 = vector.extract_strided_slice %2 {offsets = [18, 0], sizes = [1, 96], strides = [1, 1]} : vector<27x256xf32> to vector<1x96xf32>
    %42 = vector.broadcast %41 : vector<1x96xf32> to vector<16x96xf32>
    %43 = arith.addf %40, %42 : vector<16x96xf32>
    %44 = vector.extract_strided_slice %43 {offsets = [0, 0], sizes = [16, 32], strides = [1, 1]} : vector<16x96xf32> to vector<16x32xf32>
    %45 = arith.truncf %44 : vector<16x32xf32> to vector<16x32xbf16>
    %46 = vector.extract_strided_slice %43 {offsets = [0, 32], sizes = [16, 32], strides = [1, 1]} : vector<16x96xf32> to vector<16x32xf32>
    %47 = arith.truncf %46 : vector<16x32xf32> to vector<16x32xbf16>
    %48 = vector.extract_strided_slice %43 {offsets = [0, 64], sizes = [16, 32], strides = [1, 1]} : vector<16x96xf32> to vector<16x32xf32>
    %49 = arith.truncf %48 : vector<16x32xf32> to vector<16x32xbf16>
    %cst_13 = arith.constant dense<0.000000e+00> : vector<16x16xf32>
    %50 = tpu.matmul %45, %47, %cst_13 {dimension_numbers = #tpu.dot_dimension_numbers<[1], [1], [0], [0], [0, 0, 1, 0], [], []>} : vector<16x32xbf16>, vector<16x32xbf16>, vector<16x16xf32> -> vector<16x16xf32>
    %cst_14 = arith.constant 0.176776692 : f32
    %51 = vector.broadcast %cst_14 : f32 to vector<16x16xf32>
    %52 = arith.mulf %50, %51 : vector<16x16xf32>
    %53 = tpu.iota {dimensions = array<i32: 0>} : vector<16x16xi32>
    %54 = tpu.iota {dimensions = array<i32: 1>} : vector<16x16xi32>
    %c3_i32 = arith.constant 3 : i32
    %55 = vector.broadcast %c3_i32 : i32 to vector<16x16xi32>
    %56 = arith.shrsi %53, %55 : vector<16x16xi32>
    %c3_i32_15 = arith.constant 3 : i32
    %57 = vector.broadcast %c3_i32_15 : i32 to vector<16x16xi32>
    %58 = arith.shrsi %54, %57 : vector<16x16xi32>
    %59 = arith.cmpi eq, %56, %58 : vector<16x16xi32>
    %c0_16 = arith.constant 0 : index
    %c0_17 = arith.constant 0 : index
    %60 = vector.load %arg2[%c0_16, %c0_17] : memref<1x16xi32, #tpu.memory_space<vmem>>, vector<1x16xi32>
    %c0_i32 = arith.constant 0 : i32
    %61 = vector.broadcast %c0_i32 : i32 to vector<1x16xi32>
    %62 = arith.cmpi sgt, %60, %61 : vector<1x16xi32>
    %63 = vector.broadcast %62 : vector<1x16xi1> to vector<16x16xi1>
    %64 = arith.andi %59, %63 : vector<16x16xi1>
    %cst_18 = arith.constant -1.000000e+09 : f32
    %65 = vector.broadcast %cst_18 : f32 to vector<16x16xf32>
    %66 = arith.select %64, %52, %65 : vector<16x16xi1>, vector<16x16xf32>
    %cst_19 = arith.constant dense<0xFF800000> : vector<16xf32>
    %67 = vector.multi_reduction <maximumf>, %66, %cst_19 [1] : vector<16x16xf32> to vector<16xf32>
    %68 = vector.shape_cast %67 : vector<16xf32> to vector<16x1xf32>
    %69 = vector.broadcast %68 : vector<16x1xf32> to vector<16x16xf32>
    %70 = arith.subf %66, %69 : vector<16x16xf32>
    %71 = math.exp %70 : vector<16x16xf32>
    %cst_20 = arith.constant dense<0.000000e+00> : vector<16xf32>
    %72 = vector.multi_reduction <add>, %71, %cst_20 [1] : vector<16x16xf32> to vector<16xf32>
    %73 = vector.shape_cast %72 : vector<16xf32> to vector<16x1xf32>
    %74 = tpu.reciprocal %73 {approx = true} : vector<16x1xf32> -> vector<16x1xf32>
    %75 = vector.broadcast %74 : vector<16x1xf32> to vector<16x16xf32>
    %76 = arith.mulf %71, %75 : vector<16x16xf32>
    %77 = arith.truncf %76 : vector<16x16xf32> to vector<16x16xbf16>
    %cst_21 = arith.constant dense<0.000000e+00> : vector<16x32xf32>
    %78 = tpu.matmul %77, %49, %cst_21 {dimension_numbers = #tpu.dot_dimension_numbers<[1], [0], [0], [1], [0, 0, 1, 1], [], []>} : vector<16x16xbf16>, vector<16x32xbf16>, vector<16x32xf32> -> vector<16x32xf32>
    %79 = arith.truncf %78 : vector<16x32xf32> to vector<16x32xbf16>
    %80 = vector.extract_strided_slice %1 {offsets = [0, 96], sizes = [32, 32], strides = [1, 1]} : vector<32x512xbf16> to vector<32x32xbf16>
    %cst_22 = arith.constant dense<0.000000e+00> : vector<16x32xf32>
    %81 = tpu.matmul %79, %80, %cst_22 {dimension_numbers = #tpu.dot_dimension_numbers<[1], [0], [0], [1], [0, 0, 1, 1], [], []>} : vector<16x32xbf16>, vector<32x32xbf16>, vector<16x32xf32> -> vector<16x32xf32>
    %82 = vector.extract_strided_slice %2 {offsets = [19, 0], sizes = [1, 32], strides = [1, 1]} : vector<27x256xf32> to vector<1x32xf32>
    %83 = vector.broadcast %82 : vector<1x32xf32> to vector<16x32xf32>
    %84 = arith.addf %81, %83 : vector<16x32xf32>
    %85 = arith.addf %37, %84 : vector<16x32xf32>
    %86 = vector.extract_strided_slice %2 {offsets = [20, 0], sizes = [1, 32], strides = [1, 1]} : vector<27x256xf32> to vector<1x32xf32>
    %87 = vector.extract_strided_slice %2 {offsets = [21, 0], sizes = [1, 32], strides = [1, 1]} : vector<27x256xf32> to vector<1x32xf32>
    %cst_23 = arith.constant dense<0.000000e+00> : vector<16xf32>
    %88 = vector.multi_reduction <add>, %85, %cst_23 [1] : vector<16x32xf32> to vector<16xf32>
    %89 = vector.shape_cast %88 : vector<16xf32> to vector<16x1xf32>
    %cst_24 = arith.constant 3.200000e+01 : f32
    %90 = vector.broadcast %cst_24 : f32 to vector<16x1xf32>
    %91 = arith.divf %89, %90 : vector<16x1xf32>
    %92 = vector.broadcast %91 : vector<16x1xf32> to vector<16x32xf32>
    %93 = arith.subf %85, %92 : vector<16x32xf32>
    %94 = arith.mulf %93, %93 : vector<16x32xf32>
    %cst_25 = arith.constant dense<0.000000e+00> : vector<16xf32>
    %95 = vector.multi_reduction <add>, %94, %cst_25 [1] : vector<16x32xf32> to vector<16xf32>
    %96 = vector.shape_cast %95 : vector<16xf32> to vector<16x1xf32>
    %cst_26 = arith.constant 3.200000e+01 : f32
    %97 = vector.broadcast %cst_26 : f32 to vector<16x1xf32>
    %98 = arith.divf %96, %97 : vector<16x1xf32>
    %99 = vector.broadcast %91 : vector<16x1xf32> to vector<16x32xf32>
    %100 = arith.subf %85, %99 : vector<16x32xf32>
    %cst_27 = arith.constant 9.99999996E-13 : f32
    %101 = vector.broadcast %cst_27 : f32 to vector<16x1xf32>
    %102 = arith.addf %98, %101 : vector<16x1xf32>
    %103 = math.rsqrt %102 : vector<16x1xf32>
    %104 = vector.broadcast %103 : vector<16x1xf32> to vector<16x32xf32>
    %105 = arith.mulf %100, %104 : vector<16x32xf32>
    %106 = vector.broadcast %86 : vector<1x32xf32> to vector<16x32xf32>
    %107 = arith.mulf %105, %106 : vector<16x32xf32>
    %108 = vector.broadcast %87 : vector<1x32xf32> to vector<16x32xf32>
    %109 = arith.addf %107, %108 : vector<16x32xf32>
    %110 = vector.shape_cast %109 : vector<16x32xf32> to vector<2x8x32xf32>
    %111 = vector.extract_strided_slice %110 {offsets = [0, 0, 0], sizes = [2, 1, 32], strides = [1, 1, 1]} : vector<2x8x32xf32> to vector<2x1x32xf32>
    %112 = vector.shape_cast %111 : vector<2x1x32xf32> to vector<2x32xf32>
    %113 = arith.truncf %112 : vector<2x32xf32> to vector<2x32xbf16>
    %114 = vector.extract_strided_slice %1 {offsets = [0, 128], sizes = [32, 128], strides = [1, 1]} : vector<32x512xbf16> to vector<32x128xbf16>
    %cst_28 = arith.constant dense<0.000000e+00> : vector<2x128xf32>
    %115 = tpu.matmul %113, %114, %cst_28 {dimension_numbers = #tpu.dot_dimension_numbers<[1], [0], [0], [1], [0, 0, 1, 1], [], []>} : vector<2x32xbf16>, vector<32x128xbf16>, vector<2x128xf32> -> vector<2x128xf32>
    %116 = vector.extract_strided_slice %2 {offsets = [22, 0], sizes = [1, 128], strides = [1, 1]} : vector<27x256xf32> to vector<1x128xf32>
    %117 = vector.broadcast %116 : vector<1x128xf32> to vector<2x128xf32>
    %118 = arith.addf %115, %117 : vector<2x128xf32>
    %119 = arith.mulf %118, %118 : vector<2x128xf32>
    %120 = arith.mulf %118, %119 : vector<2x128xf32>
    %cst_29 = arith.constant 4.471500e-02 : f32
    %121 = vector.broadcast %cst_29 : f32 to vector<2x128xf32>
    %122 = arith.mulf %121, %120 : vector<2x128xf32>
    %123 = arith.addf %118, %122 : vector<2x128xf32>
    %cst_30 = arith.constant 0.797884583 : f32
    %124 = vector.broadcast %cst_30 : f32 to vector<2x128xf32>
    %125 = arith.mulf %124, %123 : vector<2x128xf32>
    %126 = math.tanh %125 : vector<2x128xf32>
    %cst_31 = arith.constant 1.000000e+00 : f32
    %127 = vector.broadcast %cst_31 : f32 to vector<2x128xf32>
    %128 = arith.addf %127, %126 : vector<2x128xf32>
    %cst_32 = arith.constant 5.000000e-01 : f32
    %129 = vector.broadcast %cst_32 : f32 to vector<2x128xf32>
    %130 = arith.mulf %129, %128 : vector<2x128xf32>
    %131 = arith.mulf %118, %130 : vector<2x128xf32>
    %132 = arith.truncf %131 : vector<2x128xf32> to vector<2x128xbf16>
    %133 = vector.extract_strided_slice %0 {offsets = [0, 32], sizes = [128, 32], strides = [1, 1]} : vector<128x64xbf16> to vector<128x32xbf16>
    %cst_33 = arith.constant dense<0.000000e+00> : vector<2x32xf32>
    %134 = tpu.matmul %132, %133, %cst_33 {dimension_numbers = #tpu.dot_dimension_numbers<[1], [0], [0], [1], [0, 0, 1, 1], [], []>} : vector<2x128xbf16>, vector<128x32xbf16>, vector<2x32xf32> -> vector<2x32xf32>
    %135 = vector.extract_strided_slice %2 {offsets = [23, 0], sizes = [1, 32], strides = [1, 1]} : vector<27x256xf32> to vector<1x32xf32>
    %136 = vector.broadcast %135 : vector<1x32xf32> to vector<2x32xf32>
    %137 = arith.addf %134, %136 : vector<2x32xf32>
    %138 = arith.addf %112, %137 : vector<2x32xf32>
    %139 = vector.extract_strided_slice %2 {offsets = [24, 0], sizes = [1, 32], strides = [1, 1]} : vector<27x256xf32> to vector<1x32xf32>
    %140 = vector.extract_strided_slice %2 {offsets = [25, 0], sizes = [1, 32], strides = [1, 1]} : vector<27x256xf32> to vector<1x32xf32>
    %cst_34 = arith.constant dense<0.000000e+00> : vector<2xf32>
    %141 = vector.multi_reduction <add>, %138, %cst_34 [1] : vector<2x32xf32> to vector<2xf32>
    %142 = vector.shape_cast %141 : vector<2xf32> to vector<2x1xf32>
    %cst_35 = arith.constant 3.200000e+01 : f32
    %143 = vector.broadcast %cst_35 : f32 to vector<2x1xf32>
    %144 = arith.divf %142, %143 : vector<2x1xf32>
    %145 = vector.broadcast %144 : vector<2x1xf32> to vector<2x32xf32>
    %146 = arith.subf %138, %145 : vector<2x32xf32>
    %147 = arith.mulf %146, %146 : vector<2x32xf32>
    %cst_36 = arith.constant dense<0.000000e+00> : vector<2xf32>
    %148 = vector.multi_reduction <add>, %147, %cst_36 [1] : vector<2x32xf32> to vector<2xf32>
    %149 = vector.shape_cast %148 : vector<2xf32> to vector<2x1xf32>
    %cst_37 = arith.constant 3.200000e+01 : f32
    %150 = vector.broadcast %cst_37 : f32 to vector<2x1xf32>
    %151 = arith.divf %149, %150 : vector<2x1xf32>
    %152 = vector.broadcast %144 : vector<2x1xf32> to vector<2x32xf32>
    %153 = arith.subf %138, %152 : vector<2x32xf32>
    %cst_38 = arith.constant 9.99999996E-13 : f32
    %154 = vector.broadcast %cst_38 : f32 to vector<2x1xf32>
    %155 = arith.addf %151, %154 : vector<2x1xf32>
    %156 = math.rsqrt %155 : vector<2x1xf32>
    %157 = vector.broadcast %156 : vector<2x1xf32> to vector<2x32xf32>
    %158 = arith.mulf %153, %157 : vector<2x32xf32>
    %159 = vector.broadcast %139 : vector<1x32xf32> to vector<2x32xf32>
    %160 = arith.mulf %158, %159 : vector<2x32xf32>
    %161 = vector.broadcast %140 : vector<1x32xf32> to vector<2x32xf32>
    %162 = arith.addf %160, %161 : vector<2x32xf32>
    %163 = arith.truncf %162 : vector<2x32xf32> to vector<2x32xbf16>
    %164 = vector.extract_strided_slice %1 {offsets = [0, 256], sizes = [32, 256], strides = [1, 1]} : vector<32x512xbf16> to vector<32x256xbf16>
    %cst_39 = arith.constant dense<0.000000e+00> : vector<2x256xf32>
    %165 = tpu.matmul %163, %164, %cst_39 {dimension_numbers = #tpu.dot_dimension_numbers<[1], [0], [0], [1], [0, 0, 1, 1], [], []>} : vector<2x32xbf16>, vector<32x256xbf16>, vector<2x256xf32> -> vector<2x256xf32>
    %166 = vector.extract_strided_slice %2 {offsets = [26, 0], sizes = [1, 256], strides = [1, 1]} : vector<27x256xf32> to vector<1x256xf32>
    %167 = vector.broadcast %166 : vector<1x256xf32> to vector<2x256xf32>
    %168 = arith.addf %165, %167 : vector<2x256xf32>
    %cst_40 = arith.constant 0.000000e+00 : f32
    %169 = vector.broadcast %cst_40 : f32 to vector<2x256xf32>
    %170 = arith.maximumf %168, %169 : vector<2x256xf32>
    %c0_41 = arith.constant 0 : index
    %c0_42 = arith.constant 0 : index
    %171 = vector.load %arg6[%c0_41, %c0_42] : memref<2x256xf32, #tpu.memory_space<vmem>>, vector<2x256xf32>
    tpu.vector_store %arg6[%c0_41, %c0_42], %170 {strides = array<i32>} : memref<2x256xf32, #tpu.memory_space<vmem>>, vector<2x256xf32>,
    return
  }
  func.func @transform_0(%arg0: i32) -> (i32, i32) {
    %c0_i32 = arith.constant 0 : i32
    %c0_i32_0 = arith.constant 0 : i32
    %c0_i32_1 = arith.constant 0 : i32
    return %c0_i32, %c0_i32_0 : i32, i32
  }
  func.func @transform_1(%arg0: i32) -> (i32, i32) {
    %c0_i32 = arith.constant 0 : i32
    %c0_i32_0 = arith.constant 0 : i32
    %c0_i32_1 = arith.constant 0 : i32
    return %c0_i32, %c0_i32_0 : i32, i32
  }
  func.func @transform_2(%arg0: i32) -> (i32, i32) {
    %c0_i32 = arith.constant 0 : i32
    %c0_i32_0 = arith.constant 0 : i32
    %c0_i32_1 = arith.constant 0 : i32
    return %c0_i32, %c0_i32_0 : i32, i32
  }
  func.func @transform_3(%arg0: i32) -> (i32, i32) {
    %c0_i32 = arith.constant 0 : i32
    %c0_i32_0 = arith.constant 0 : i32
    %c0_i32_1 = arith.constant 0 : i32
    return %c0_i32, %c0_i32_0 : i32, i32
  }
  func.func @transform_4(%arg0: i32) -> (i32, i32) {
    %c0_i32 = arith.constant 0 : i32
    %c0_i32_0 = arith.constant 0 : i32
    %c0_i32_1 = arith.constant 0 : i32
    return %c0_i32, %c0_i32_0 : i32, i32
  }
  func.func @transform_5(%arg0: i32) -> (i32, i32) {
    %c0_i32 = arith.constant 0 : i32
    %c0_i32_0 = arith.constant 0 : i32
    %c0_i32_1 = arith.constant 0 : i32
    return %c0_i32, %c0_i32_0 : i32, i32
  }
}

</mosaic_0001>

<bundles_post_ra>
// kernel: tpu_custom_call.1
= control target key start
LH: loop header
LB: loop body
LE: loop exit
PB: predicated region body
PF: predicated region fallthrough
CT: control target
= control target key end

     0   :  { %10 = vsyncpa [#allocation3], 0  ;;  %s1467_s0 = inlined_call_operand.vmem [shape: s32[1,16], index: 0, kind: input, shape index: {}]   ;;  %s1468_s1 = inlined_call_operand.vmem [shape: s32[1,16], index: 1, kind: input, shape index: {}]   ;;  %s1469_s2 = inlined_call_operand.vmem [shape: bf16[128,64], index: 2, kind: input, shape index: {}]   ;;  %s1470_s3 = inlined_call_operand.vmem [shape: bf16[32,512], index: 3, kind: input, shape index: {}]   ;;  %s1471_s4 = inlined_call_operand.hbm [shape: f32[27,256], index: 4, kind: input, shape index: {}]   ;;  %s1472_s5 = inlined_call_operand.hbm [shape: f32[2,256], index: 5, kind: output, shape index: {}]  }
   0x1   :  { %11 = vsyncpa [#allocation4], 0  ;;  %s1138_s18 = smov [#allocation2]   ;;  %s1090_s22 = scalar_lea.hbm %s1471_s4, 1024 }
   0x2   :  { %s25_s19 = sshll.u32 %s1138_s18, 4  ;;  %p1091_p0 = scmp.ne.s32.totalorder %s1471_s4, %s1090_s22  ;;  %s26_s19 = int_to_ptr.vmem [resolvable:$true] %s25_s19 }
   0x3   :  { %p1094_p1 = scmp.lt.u32.totalorder %s1090_s22, %s1471_s4 }
   0x5   :  { %p1096_p2 = pnand %p1094_p1, %p1091_p0 }
   0x7   :  { %1099 = shalt.err (!%p1096_p2)
}
   0x8   :  { %s1100_s27 = scalar_lea.vmem %s26_s19, 1024  ;;  %p1105_p4 = scmp.lt.s32.totalorder %s26_s19, %s26_s19 }
   0x9   :  { %p1101_p3 = scmp.ne.s32.totalorder %s26_s19, %s1100_s27  ;;  %p1106_p5 = scmp.lt.s32.totalorder %s1100_s27, %s1100_s27 }
   0xb   :  { %p1107_p6 = por %p1106_p5, %p1105_p4 }
   0xd   :  { %p1108_p7 = pnand %p1107_p6, %p1101_p3 }
   0xf   :  { %1111 = shalt.err (!%p1108_p7)
}
  0x10   :  { %s1139_s28 = smov 256   ;;  %s1140_s29 = smov 16  }
  0x11   :  { %31 = dma.hbm_to_vmem [thread:$0]  %s1471_s4, 1024, %s26_s19, [#allocation3], %s1139_s28, %s1139_s28, %s1140_s29  }
  0x12   :  { %1134 = dma.done.wait [#allocation3], 1024  }
  0x13   :  { %1135 = vsyncadd [#allocation3], 4294966272  ;;  %v66_v0 = vlaneseq  ;;  %v1141_v1 = vmov 0.0   ;;  %vm1142_vm0 = vmmov 0   ;;  %v1209_v8 = vld [vmem:[%s1467_s0] ss:$0 sm:$0xff] }
  0x14   :  { %964 = vmatprep.subr.bf16.mxu0 %v1141_v1  ;;  %980 = vmatprep.mubr.msk.bf16.mxu0 %vm1142_vm0, %v1141_v1  ;;  %v1215_v10 = vld [vmem:[%s1469_s2] sm:$0xff]   ;;  %v1235_v17 = vld [vmem:[%s1469_s2 + $0x8] sm:$0xff]   ;;  %v1243_v21 = vld [vmem:[%s1469_s2 + $0x10] sm:$0xff]   ;;  %s1143_s26 = smov 96   ;;  %s1146_s29 = smov 32  }
  0x15   :  { %v1194_v2 = vshrl.u32 %v66_v0, 7  ;;  %992 = vmatprep.subr.bf16.mxu1 %v1141_v1  ;;  %994 = vmatprep.mubr.msk.bf16.mxu1 %vm1142_vm0, %v1141_v1  ;;  %v1256_v27 = vld [vmem:[%s1469_s2 + $0x18] sm:$0xff]   ;;  %v1269_v33 = vld [vmem:[%s1469_s2 + $0x20] sm:$0xff]   ;;  %v1282_v39 = vld [vmem:[%s1469_s2 + $0x28] sm:$0xff]  }
  0x16   :  { %965 = vmatpush3.bf16.msra.mxu0 %v1215_v10  ;;  %v1295_v45 = vld [vmem:[%s1469_s2 + $0x30] sm:$0xff]   ;;  %v1306_v49 = vld [vmem:[%s1469_s2 + $0x38] sm:$0xff]   ;;  %v60_v52 = vld [vmem:[#allocation2] sm:$0xff] }
  0x17   :  { %v1200_v3 = vadd.s32 8, %v1194_v2  ;;  %v69_v4 = vadd.s32 16, %v1194_v2  ;;  %v70_v5 = vadd.s32 24, %v1194_v2  ;;  %v71_v6 = vadd.s32 32, %v1194_v2  ;;  %966 = vmatprep.subr.bf16.mxu0 %v1141_v1  ;;  %v61_v54 = vld [vmem:[#allocation2 + $0x10] sm:$0xff] }
  0x18   :  { %v72_v7 = vadd.s32 40, %v1194_v2  ;;  %v73_v9 = vadd.s32 48, %v1194_v2  ;;  %vm87_vm1 = vcmp.eq.s32.totalorder %v1194_v2, %v1209_v8  ;;  %v74_v16 = vadd.s32 56, %v1194_v2 }
  0x19   :  { %vm88_vm2 = vcmp.eq.s32.totalorder %v1200_v3, %v1209_v8  ;;  %vm89_vm3 = vcmp.eq.s32.totalorder %v69_v4, %v1209_v8  ;;  %vm90_vm4 = vcmp.eq.s32.totalorder %v70_v5, %v1209_v8  ;;  %v894_v11 = vsel %vm87_vm1, 1.0, %v1141_v1 }
  0x1a   :  { %v895_v12 = vsel %vm88_vm2, 1.0, %v1141_v1  ;;  %v896_v13 = vsel %vm89_vm3, 1.0, %v1141_v1  ;;  %v897_v14 = vsel %vm90_vm4, 1.0, %v1141_v1  ;;  %vm91_vm5 = vcmp.eq.s32.totalorder %v71_v6, %v1209_v8  ;;  %967 = vmatpush3.bf16.msra.mxu0 %v1235_v17 }
  0x1b   :  { %v135_v15 = vpack.c.bf16 %v895_v12, %v894_v11  ;;  %vm92_vm6 = vcmp.eq.s32.totalorder %v72_v7, %v1209_v8  ;;  %v136_v18 = vpack.c.bf16 %v897_v14, %v896_v13  ;;  %v898_v19 = vsel %vm91_vm5, 1.0, %v1141_v1  ;;  %968 = vmatprep.subr.bf16.mxu0 %v1141_v1  ;;  %v1320_v13 = vld [vmem:[%s1470_s3] ss:$16 sps:$4 sm:$0xff]  }
  0x1c   :  { %v899_v20 = vsel %vm92_vm6, 1.0, %v1141_v1  ;;  %vm93_vm7 = vcmp.eq.s32.totalorder %v73_v9, %v1209_v8  ;;  %vm94_vm8 = vcmp.eq.s32.totalorder %v74_v16, %v1209_v8  ;;  %v75_v22 = vadd.s32 64, %v1194_v2  ;;  %v1327_v14 = vld [vmem:[%s1470_s3 + $0x20] ss:$16 sps:$4 sm:$0xff]  }
  0x1d   :  { %143 = vxpose.xlu0.c.b16.start [1/8] (narrow) %v135_v15, 16  ;;  %v76_v23 = vadd.s32 72, %v1194_v2  ;;  %v137_v24 = vpack.c.bf16 %v899_v20, %v898_v19  ;;  %v900_v25 = vsel %vm93_vm7, 1.0, %v1141_v1  ;;  %v901_v26 = vsel %vm94_vm8, 1.0, %v1141_v1 }
  0x1e   :  { %969 = vmatpush3.bf16.msra.mxu0 %v1243_v21  ;;  %vm95_vm9 = vcmp.eq.s32.totalorder %v75_v22, %v1209_v8  ;;  %v77_v28 = vadd.s32 80, %v1194_v2  ;;  %v78_v29 = vadd.s32 88, %v1194_v2  ;;  %v138_v30 = vpack.c.bf16 %v901_v26, %v900_v25 }
  0x1f   :  { %vm96_vm10 = vcmp.eq.s32.totalorder %v76_v23, %v1209_v8  ;;  %970 = vmatprep.subr.bf16.mxu0 %v1141_v1  ;;  %v902_v31 = vsel %vm95_vm9, 1.0, %v1141_v1  ;;  %v79_v34 = vadd.s32 96, %v1194_v2  ;;  %v80_v35 = vadd.s32 104, %v1194_v2 }
  0x20   :  { %v903_v32 = vsel %vm96_vm10, 1.0, %v1141_v1  ;;  %vm97_vm11 = vcmp.eq.s32.totalorder %v77_v28, %v1209_v8  ;;  %vm98_vm12 = vcmp.eq.s32.totalorder %v78_v29, %v1209_v8  ;;  %v81_v40 = vadd.s32 112, %v1194_v2 }
  0x21   :  { %144 = vxpose.xlu0.c.b16.cont [2/8] (narrow) %v136_v18, 16  ;;  %v139_v36 = vpack.c.bf16 %v903_v32, %v902_v31  ;;  %v904_v37 = vsel %vm97_vm11, 1.0, %v1141_v1  ;;  %v905_v38 = vsel %vm98_vm12, 1.0, %v1141_v1  ;;  %vm99_vm13 = vcmp.eq.s32.totalorder %v79_v34, %v1209_v8 }
  0x22   :  { %971 = vmatpush3.bf16.msra.mxu0 %v1256_v27  ;;  %vm100_vm14 = vcmp.eq.s32.totalorder %v80_v35, %v1209_v8  ;;  %v82_v41 = vadd.s32 120, %v1194_v2  ;;  %v140_v42 = vpack.c.bf16 %v905_v38, %v904_v37  ;;  %v906_v43 = vsel %vm99_vm13, 1.0, %v1141_v1 }
  0x23   :  { %972 = vmatprep.subr.bf16.mxu0 %v1141_v1  ;;  %v907_v44 = vsel %vm100_vm14, 1.0, %v1141_v1  ;;  %vm101_vm15 = vcmp.eq.s32.totalorder %v81_v40, %v1209_v8  ;;  %vm248_vm2 = vcmask 261120   ;;  %v1332_v23 = vsub.s32 0, %v1194_v2 }
  0x24   :  { %vm102_vm1 = vcmp.eq.s32.totalorder %v82_v41, %v1209_v8  ;;  %v141_v46 = vpack.c.bf16 %v907_v44, %v906_v43  ;;  %v908_v47 = vsel %vm101_vm15, 1.0, %v1141_v1  ;;  %v284_v29 = vsub.s32 1, %v1194_v2 }
  0x25   :  { %145 = vxpose.xlu0.c.b16.cont [3/8] (narrow) %v137_v24, 16  ;;  %v909_v48 = vsel %vm102_vm1, 1.0, %v1141_v1  ;;  %v1334_v24 = vld [vmem:[#allocation2 + $0x20] sm:$0xff]  ;;  %v1352_v40 = vsub.s32 2, %v1194_v2  ;;  %vm421_vm8 = vcmask 130048   ;;  %vm741_vm10 = vcmask 254976  }
  0x26   :  { %973 = vmatpush3.bf16.msra.mxu0 %v1269_v33  ;;  %v142_v50 = vpack.c.bf16 %v909_v48, %v908_v47  ;;  %v279_v26 = vrot.slane %v1334_v24, %v1332_v23  ;;  %v285_v34 = vrot.slane %v1334_v24, %v284_v29 }
  0x27   :  { %974 = vmatprep.subr.bf16.mxu0 %v1141_v1  ;;  %v292_v41 = vrot.slane %v1334_v24, %v1352_v40 }
  0x29   :  { %146 = vxpose.xlu0.c.b16.cont [4/8] (narrow) %v138_v30, 16 }
  0x2a   :  { %975 = vmatpush3.bf16.msra.mxu0 %v1282_v39 }
  0x2b   :  { %976 = vmatprep.subr.bf16.mxu0 %v1141_v1 }
  0x2d   :  { %147 = vxpose.xlu0.c.b16.cont [5/8] (narrow) %v139_v36, 16 }
  0x2e   :  { %977 = vmatpush3.bf16.msra.mxu0 %v1295_v45 }
  0x2f   :  { %978 = vmatprep.subr.bf16.mxu0 %v1141_v1 }
  0x31   :  { %148 = vxpose.xlu0.c.b16.cont [6/8] (narrow) %v140_v42, 16 }
  0x32   :  { %979 = vmatpush3.bf16.msra.mxu0 %v1306_v49 }
  0x33   :  { %984 = vmatprep.subr.bf16.mxu0 %v1141_v1 }
  0x35   :  { %149 = vxpose.xlu0.c.b16.cont [7/8] (narrow) %v141_v46, 16 }
  0x39   :  { %150 = vxpose.xlu0.c.b16.end [8/8] (narrow) %v142_v50, 16 }
  0x83   :  { %v151_v51 = vpop.trf.xlu0 }
  0x84   :  { %981 = vmatmul.mubr.bf16.vlgmr.msra.gmra.mrb[0].mxu0 %v151_v51 }
  0x85   :  { %988 = vmatprep.mubr.msk.bf16.mxu0 %vm1142_vm0, %v1141_v1  ;;  %985 = vmatpush3.bf16.msra.mxu0 %v1320_v13 }
  0x86   :  { %986 = vmatprep.subr.bf16.mxu0 %v1141_v1 }
  0x89   :  { %987 = vmatpush3.bf16.msra.mxu0 %v1327_v14 }
  0x8a   :  { %1012 = vmatprep.subr.bf16.mxu0 %v1141_v1 }
 0x157   :  { %v241_v53 = vpop.f32.mrb[0].mxu0 }
 0x158   :  { %v242_v55 = vadd.f32 %v241_v53, %v60_v52  ;;  %v982_v56 = vpop.f32.mrb[1].mxu0  ;;  %v409_v53 = vld [vmem:[%s1468_s1] sm:$0x1]  ;;  %s1145_s1 = smov 64  }
 0x159   :  { %v244_v57 = vpop.f32.mrb[2].mxu0  ;;  %vm410_vm3 = vcmp.gt.s32.totalorder %v409_v53, 0 }
 0x15a   :  { %v245_v58 = vadd.f32 %v244_v57, %v61_v54  ;;  %v983_v59 = vpop.f32.mrb[3].mxu0  ;;  %v249_v60 = vsel %vm248_vm2, %v242_v55, 0.0  ;;  %v403_v54 = vand.u32 127, %v66_v0  ;;  %v404_v57 = vshra.s32 %v1194_v2, 3 }
 0x15b   :  { %250 = vadd.xlane.f32.xlu1 %v249_v60  ;;  %v405_v60 = vshra.s32 %v1200_v3, 3 }
 0x15c   :  { %v252_v61 = vsel %vm248_vm2, %v245_v58, 0.0 }
 0x15f   :  { %253 = vadd.xlane.f32.xlu1 %v252_v61 }
 0x1e8   :  { %v251_v62 = vpop.xlane.xlu1 %250 }
 0x1e9   :  { %v256_v63 = vmul.f32 0.03125, %v251_v62 }
 0x1eb   :  { %v258_v4 = vsub.f32 %v242_v55, %v256_v63  ;;  %v1144_v55 = vmov 0  }
 0x1ec   :  { %v254_v5 = vpop.xlane.xlu1 %253  ;;  %v411_v56 = vsel %vm410_vm3, 1, %v1144_v55 }
 0x1ed   :  { %v257_v6 = vmul.f32 0.03125, %v254_v5  ;;  %v260_v7 = vmul.f32 %v258_v4, %v258_v4  ;;  %v415_v59 = vrot.slane %v411_v56, %v1332_v23 }
 0x1ef   :  { %v259_v8 = vsub.f32 %v245_v58, %v257_v6  ;;  %v262_v9 = vsel %vm248_vm2, %v260_v7, 0.0  ;;  %v406_v58 = vshra.s32 %v403_v54, 3  ;;  %vm416_vm5 = vcmp.eq.s32.totalorder %v415_v59, 1 }
 0x1f0   :  { %263 = vadd.xlane.f32.xlu1 %v262_v9 }
 0x1f1   :  { %v261_v11 = vmul.f32 %v259_v8, %v259_v8  ;;  %vm407_vm4 = vcmp.eq.s32.totalorder %v404_v57, %v406_v58  ;;  %vm408_vm6 = vcmp.eq.s32.totalorder %v405_v60, %v406_v58 }
 0x1f2   :  { %vm417_vm7 = vmand %vm407_vm4, %vm416_vm5 }
 0x1f3   :  { %v265_v12 = vsel %vm248_vm2, %v261_v11, 0.0  ;;  %vm418_vm9 = vmand %vm408_vm6, %vm416_vm5 }
 0x1f4   :  { %266 = vadd.xlane.f32.xlu1 %v265_v12 }
 0x27d   :  { %v264_v15 = vpop.xlane.xlu1 %263 }
 0x27e   :  { %v268_v16 = vmul.f32 0.03125, %v264_v15 }
 0x280   :  { %v270_v18 = vadd.f32 1e-12, %v268_v16 }
 0x281   :  { %v267_v19 = vpop.xlane.xlu1 %266 }
 0x282   :  { %1070 = vrsqrt.f32 %v270_v18  ;;  %v269_v20 = vmul.f32 0.03125, %v267_v19 }
 0x284   :  { %v271_v22 = vadd.f32 1e-12, %v269_v20 }
 0x286   :  { %1072 = vrsqrt.f32 %v271_v22 }
 0x28c   :  { %v1071_v25 = vpop.eup %1070 }
 0x28d   :  { %v274_v28 = vmul.f32 %v1071_v25, %v258_v4 }
 0x28f   :  { %v280_v31 = vmul.f32 %v279_v26, %v274_v28 }
 0x290   :  { %v1073_v30 = vpop.eup %1072 }
 0x291   :  { %v275_v32 = vmul.f32 %v1073_v30, %v259_v8  ;;  %v1342_v36 = vadd.f32 %v285_v34, %v280_v31 }
 0x293   :  { %v281_v35 = vmul.f32 %v279_v26, %v275_v32 }
 0x295   :  { %v1344_v37 = vadd.f32 %v285_v34, %v281_v35 }
 0x297   :  { %v288_v38 = vpack.c.bf16 %v1344_v37, %v1342_v36 }
 0x299   :  { %989 = vmatmul.mubr.msk.bf16.vlgmr.msra.gmra.mrb[4].mxu0 %vm248_vm2, %v288_v38 }
 0x29a   :  { %1016 = vmatprep.mubr.msk.bf16.mxu0 %vm1142_vm0, %v1141_v1 }
 0x36c   :  { %v342_v42 = vpop.f32.mrb[4].mxu0 }
 0x36d   :  { %v990_v43 = vpop.f32.mrb[5].mxu0  ;;  %v343_v46 = vadd.f32 %v342_v42, %v292_v41 }
 0x36e   :  { %v345_v44 = vpop.f32.mrb[6].mxu0 }
 0x36f   :  { %v346_v47 = vadd.f32 %v345_v44, %v292_v41  ;;  %v991_v48 = vpop.f32.mrb[7].mxu0 }
 0x371   :  { %v349_v50 = vpack.c.bf16 %v346_v47, %v343_v46  ;;  %v495_v47 = vsub.s32 3, %v1194_v2 }
 0x373   :  { %351 = vrot.lane.b32.xlu1 %v349_v50, %s1143_s26  ;;  %v496_v48 = vrot.slane %v1334_v24, %v495_v47 }
 0x3e5   :  { %v352_v51 = vpop.permute.xlu1 %351 }
 0x3e6   :  { %v357_v52 = vsel %vm248_vm2, %v352_v51, 0 }
 0x3e7   :  { %993 = vmatpush3.bf16.xpose.msra.mxu1 %v357_v52 }
 0x3e8   :  { %998 = vmatprep.subr.bf16.mxu1 %v1141_v1 }
 0x3ee   :  { %995 = vmatmul.mubr.msk.bf16.vlgmr.msra.gmra.mrb[0].mxu1 %vm248_vm2, %v349_v50 }
 0x3ef   :  { %1000 = vmatprep.mubr.msk.bf16.mxu1 %vm1142_vm0, %v1141_v1 }
 0x4c1   :  { %v393_v61 = vpop.f32.mrb[0].mxu1 }
 0x4c2   :  { %v400_v62 = vmul.f32 0.17677669, %v393_v61  ;;  %v996_v63 = vpop.f32.mrb[1].mxu1 }
 0x4c3   :  { %v396_v4 = vpop.f32.mrb[2].mxu1 }
 0x4c4   :  { %v401_v0 = vmul.f32 0.17677669, %v396_v4  ;;  %v997_v5 = vpop.f32.mrb[3].mxu1  ;;  %v419_v6 = vsel %vm417_vm7, %v400_v62, -1e+09 }
 0x4c5   :  { %v422_v7 = vsel %vm421_vm8, %v419_v6, -inf }
 0x4c6   :  { %423 = vmax.xlane.f32.xlu0 %v422_v7  ;;  %v420_v8 = vsel %vm418_vm9, %v401_v0, -1e+09 }
 0x4c7   :  { %v425_v9 = vsel %vm421_vm8, %v420_v8, -inf }
 0x4c8   :  { %426 = vmax.xlane.f32.xlu1 %v425_v9 }
 0x4d9   :  { %497 = vrot.lane.b32.xlu1 %v1320_v13, %s1146_s29 }
 0x553   :  { %v424_v3 = vpop.xlane.xlu0 %423 }
 0x554   :  { %v428_v11 = vsub.f32 %v419_v6, %v424_v3  ;;  %v583_v3 = vsub.s32 5, %v1194_v2 }
 0x555   :  { %v427_v12 = vpop.xlane.xlu1 %426 }
 0x556   :  { %v430_v15 = vmul.f32 1.442695, %v428_v11  ;;  %v429_v16 = vsub.f32 %v420_v8, %v427_v12 }
 0x558   :  { %1074 = vpow2.f32 %v430_v15  ;;  %v432_v18 = vmul.f32 1.442695, %v429_v16  ;;  %v584_v15 = vrot.slane %v1334_v24, %v583_v3 }
 0x559   :  { %v498_v41 = vpop.permute.xlu1 %497 }
 0x55a   :  { %1076 = vpow2.f32 %v432_v18 }
 0x562   :  { %v1075_v19 = vpop.eup %1074 }
 0x563   :  { %v434_v20 = vsel %vm421_vm8, %v1075_v19, 0.0 }
 0x564   :  { %v1077_v22 = vpop.eup %1076  ;;  %435 = vadd.xlane.f32.xlu0 %v434_v20 }
 0x565   :  { %v437_v25 = vsel %vm421_vm8, %v1077_v22, 0.0 }
 0x568   :  { %438 = vadd.xlane.f32.xlu0 %v437_v25 }
 0x57e   :  { %445 = vrot.lane.b32.xlu0 %v349_v50, %s1145_s1 }
 0x582   :  { %499 = vrot.lane.b32.xlu0 %v1327_v14, %s1146_s29 }
 0x5f1   :  { %v436_v26 = vpop.xlane.xlu0 %435 }
 0x5f2   :  { %1078 = vrcp.f32 %v436_v26 }
 0x5f5   :  { %v439_v28 = vpop.xlane.xlu0 %438 }
 0x5f6   :  { %1080 = vrcp.f32 %v439_v28 }
 0x5f9   :  { %v446_v30 = vpop.permute.xlu0 %445 }
 0x5fa   :  { %999 = vmatpush3.bf16.msra.mxu1 %v446_v30 }
 0x5fb   :  { %1004 = vmatprep.subr.bf16.mxu1 %v1141_v1 }
 0x5fc   :  { %v1079_v31 = vpop.eup %1078 }
 0x5fd   :  { %v442_v34 = vmul.f32 %v1079_v31, %v1075_v19  ;;  %v500_v13 = vpop.permute.xlu0 %499 }
 0x600   :  { %v1081_v32 = vpop.eup %1080 }
 0x601   :  { %v443_v35 = vmul.f32 %v1081_v32, %v1077_v22 }
 0x603   :  { %v444_v38 = vpack.c.bf16 %v443_v35, %v442_v34 }
 0x605   :  { %1001 = vmatmul.mubr.msk.bf16.vlgmr.msra.gmra.mrb[4].mxu1 %vm421_vm8, %v444_v38 }
 0x606   :  { %1005 = vmatpush3.bf16.msra.mxu1 %v498_v41  ;;  %1008 = vmatprep.mubr.msk.bf16.mxu1 %vm1142_vm0, %v1141_v1 }
 0x607   :  { %1006 = vmatprep.subr.bf16.mxu1 %v1141_v1 }
 0x60a   :  { %1007 = vmatpush3.bf16.msra.mxu1 %v500_v13 }
 0x60b   :  { %1020 = vmatprep.subr.bf16.mxu1 %v1141_v1 }
 0x6d8   :  { %v485_v14 = vpop.f32.mrb[4].mxu1 }
 0x6d9   :  { %v1002_v42 = vpop.f32.mrb[5].mxu1 }
 0x6da   :  { %v488_v43 = vpop.f32.mrb[6].mxu1 }
 0x6db   :  { %v492_v44 = vpack.c.bf16 %v488_v43, %v485_v14  ;;  %v1003_v46 = vpop.f32.mrb[7].mxu1 }
 0x6dc   :  { %v591_v46 = vsub.s32 6, %v1194_v2 }
 0x6dd   :  { %1009 = vmatmul.mubr.msk.bf16.vlgmr.msra.gmra.mrb[8].mxu1 %vm248_vm2, %v492_v44 }
 0x6de   :  { %1036 = vmatprep.mubr.msk.bf16.mxu1 %vm1142_vm0, %v1141_v1  ;;  %vm598_vm0 = vcmask 1041409   ;;  %v592_v47 = vrot.slane %v1334_v24, %v591_v46 }
 0x7b0   :  { %v540_v50 = vpop.f32.mrb[8].mxu1 }
 0x7b1   :  { %v541_v51 = vadd.f32 %v540_v50, %v496_v48  ;;  %v1010_v52 = vpop.f32.mrb[9].mxu1 }
 0x7b2   :  { %v543_v53 = vpop.f32.mrb[10].mxu1 }
 0x7b3   :  { %v544_v54 = vadd.f32 %v543_v53, %v496_v48  ;;  %v1011_v56 = vpop.f32.mrb[11].mxu1  ;;  %v547_v57 = vadd.f32 %v541_v51, %v1342_v36 }
 0x7b5   :  { %v549_v58 = vsel %vm248_vm2, %v547_v57, 0.0  ;;  %v548_v59 = vadd.f32 %v544_v54, %v1344_v37 }
 0x7b6   :  { %550 = vadd.xlane.f32.xlu1 %v549_v58 }
 0x7b7   :  { %v552_v60 = vsel %vm248_vm2, %v548_v59, 0.0 }
 0x7b8   :  { %553 = vadd.xlane.f32.xlu0 %v552_v60 }
 0x7c7   :  { %668 = vrot.lane.b32.xlu1 %v1235_v17, %s1143_s26 }
 0x7cb   :  { %670 = vrot.lane.b32.xlu1 %v1243_v21, %s1143_s26  ;;  %v1062_v21 = vld [vmem:[%s1470_s3 + $0x4] ss:$16 sps:$4 sm:$0xff]  }
 0x7cc   :  { %1013 = vmatpush3.bf16.msra.mxu0 %v1062_v21 }
 0x7cd   :  { %1014 = vmatprep.subr.bf16.mxu0 %v1141_v1 }
 0x7cf   :  { %674 = vrot.lane.b32.xlu1 %v1269_v33, %s1143_s26  ;;  %v1063_v33 = vld [vmem:[%s1470_s3 + $0x24] ss:$16 sps:$4 sm:$0xff]  }
 0x7d0   :  { %1015 = vmatpush3.bf16.msra.mxu0 %v1063_v33 }
 0x7d3   :  { %678 = vrot.lane.b32.xlu1 %v1295_v45, %s1143_s26 }
 0x843   :  { %v551_v36 = vpop.xlane.xlu1 %550 }
 0x844   :  { %v555_v61 = vmul.f32 0.03125, %v551_v36 }
 0x845   :  { %v554_v62 = vpop.xlane.xlu0 %553 }
 0x846   :  { %v556_v37 = vmul.f32 0.03125, %v554_v62  ;;  %v557_v63 = vsub.f32 %v547_v57, %v555_v61 }
 0x847   :  { %v669_v41 = vpop.permute.xlu1 %668 }
 0x848   :  { %v558_v4 = vsub.f32 %v548_v59, %v556_v37  ;;  %v559_v6 = vmul.f32 %v557_v63, %v557_v63  ;;  %v664_v37 = vsub.s32 7, %v1194_v2 }
 0x84a   :  { %v560_v0 = vmul.f32 %v558_v4, %v558_v4  ;;  %v561_v17 = vsel %vm248_vm2, %v559_v6, 0.0 }
 0x84b   :  { %v671_v13 = vpop.permute.xlu1 %670 }
 0x84c   :  { %v564_v5 = vsel %vm248_vm2, %v560_v0, 0.0 }
 0x84d   :  { %565 = vadd.xlane.f32.xlu0 %v564_v5 }
 0x84f   :  { %v675_v42 = vpop.permute.xlu1 %674 }
 0x851   :  { %562 = vadd.xlane.f32.xlu0 %v561_v17 }
 0x853   :  { %v679_v44 = vpop.permute.xlu1 %678 }
 0x867   :  { %666 = vrot.lane.b32.xlu0 %v1215_v10, %s1143_s26 }
 0x86b   :  { %672 = vrot.lane.b32.xlu0 %v1256_v27, %s1143_s26 }
 0x86f   :  { %676 = vrot.lane.b32.xlu0 %v1282_v39, %s1143_s26 }
 0x873   :  { %680 = vrot.lane.b32.xlu0 %v1306_v49, %s1143_s26  ;;  %v577_v49 = vsub.s32 4, %v1194_v2 }
 0x875   :  { %v578_v11 = vrot.slane %v1334_v24, %v577_v49 }
 0x8da   :  { %v566_v10 = vpop.xlane.xlu0 %565 }
 0x8db   :  { %v568_v27 = vmul.f32 0.03125, %v566_v10 }
 0x8dd   :  { %v570_v45 = vadd.f32 1e-12, %v568_v27 }
 0x8de   :  { %v563_v7 = vpop.xlane.xlu0 %562 }
 0x8df   :  { %1082 = vrsqrt.f32 %v570_v45  ;;  %v567_v39 = vmul.f32 0.03125, %v563_v7 }
 0x8e1   :  { %v569_v8 = vadd.f32 1e-12, %v567_v39 }
 0x8e2   :  { %v667_v9 = vpop.permute.xlu0 %666 }
 0x8e3   :  { %1084 = vrsqrt.f32 %v569_v8  ;;  %1021 = vmatpush3.bf16.msra.mxu1 %v667_v9 }
 0x8e4   :  { %1022 = vmatprep.subr.bf16.mxu1 %v1141_v1 }
 0x8e6   :  { %v673_v14 = vpop.permute.xlu0 %672 }
 0x8e7   :  { %1023 = vmatpush3.bf16.msra.mxu1 %v669_v41 }
 0x8e8   :  { %1024 = vmatprep.subr.bf16.mxu1 %v1141_v1 }
 0x8e9   :  { %v1083_v12 = vpop.eup %1082 }
 0x8ea   :  { %v574_v16 = vmul.f32 %v1083_v12, %v558_v4  ;;  %v677_v43 = vpop.permute.xlu0 %676 }
 0x8eb   :  { %1025 = vmatpush3.bf16.msra.mxu1 %v671_v13 }
 0x8ec   :  { %v580_v18 = vmul.f32 %v578_v11, %v574_v16  ;;  %1026 = vmatprep.subr.bf16.mxu1 %v1141_v1 }
 0x8ed   :  { %v1085_v19 = vpop.eup %1084 }
 0x8ee   :  { %v586_v20 = vadd.f32 %v584_v15, %v580_v18  ;;  %v573_v22 = vmul.f32 %v1085_v19, %v557_v63  ;;  %v665_v63 = vrot.slane %v1334_v24, %v664_v37  ;;  %v1064_v18 = vld [vmem:[%s1470_s3 + $0x8] ss:$16 sps:$4 sm:$0xff]   ;;  %v1066_v19 = vld [vmem:[%s1470_s3 + $0xc] ss:$16 sps:$4 sm:$0xff]  }
 0x8ef   :  { %1027 = vmatpush3.bf16.msra.mxu1 %v673_v14  ;;  %823 = vmatprep.subr.bf16.mxu0 %v1066_v19 }
 0x8f0   :  { %v579_v25 = vmul.f32 %v578_v11, %v573_v22  ;;  %v588_v26 = vpack.c.bf16 %v586_v20, %v586_v20  ;;  %1028 = vmatprep.subr.bf16.mxu1 %v1141_v1  ;;  %v1067_v22 = vld [vmem:[%s1470_s3 + $0x28] ss:$16 sps:$4 sm:$0xff]  }
 0x8f2   :  { %v585_v28 = vadd.f32 %v584_v15, %v579_v25  ;;  %v596_v30 = vunpack.c.l.b16 %v588_v26 }
 0x8f3   :  { %1029 = vmatpush3.bf16.msra.mxu1 %v675_v42 }
 0x8f4   :  { %v587_v31 = vpack.c.bf16 %v585_v28, %v585_v28  ;;  %v597_v34 = vrot.slane %v596_v30, 7  ;;  %1030 = vmatprep.subr.bf16.mxu1 %v1141_v1  ;;  %v63_v30 = vld [vmem:[#allocation2 + $0x30] sm:$0x7] }
 0x8f5   :  { %v788_v2 = vrot.slane %v63_v30, %v1352_v40 }
 0x8f6   :  { %v595_v32 = vunpack.c.l.b16 %v587_v31  ;;  %v774_v31 = vrot.slane %v63_v30, %v1332_v23  ;;  %v64_v23 = vld [vmem:[#allocation2 + $0x38] sm:$0x7] }
 0x8f7   :  { %1031 = vmatpush3.bf16.msra.mxu1 %v677_v43 }
 0x8f8   :  { %v599_v35 = vsel %vm598_vm0, %v597_v34, %v595_v32  ;;  %1032 = vmatprep.subr.bf16.mxu1 %v1141_v1  ;;  %v780_v34 = vrot.slane %v63_v30, %v284_v29  ;;  %v792_v29 = vrot.slane %v64_v23, %v1352_v40 }
 0x8f9   :  { %v600_v38 = vpack.c.b16 %v599_v35, %v599_v35 }
 0x8fb   :  { %1017 = vmatmul.mubr.msk.bf16.vlgmr.msra.gmra.mrb[8].mxu0 %vm248_vm2, %v600_v38  ;;  %1033 = vmatpush3.bf16.msra.mxu1 %v679_v44 }
 0x8fc   :  { %855 = vmatprep.mubr.bf16.mxu0 %v1144_v55  ;;  %1034 = vmatprep.subr.bf16.mxu1 %v1141_v1  ;;  %v681_v55 = vpop.permute.xlu0 %680 }
 0x8fd   :  { %824 = vmatpush1.bf16.msra.mxu0 %v1064_v18 }
 0x8ff   :  { %1035 = vmatpush3.bf16.msra.mxu1 %v681_v55 }
 0x9ce   :  { %v646_v48 = vpop.f32.mrb[8].mxu0 }
 0x9cf   :  { %v647_v50 = vadd.f32 %v646_v48, %v592_v47  ;;  %v1018_v51 = vpop.f32.mrb[9].mxu0 }
 0x9d0   :  { %v649_v52 = vpop.f32.mrb[10].mxu0 }
 0x9d1   :  { %v652_v53 = vmul.f32 %v647_v50, %v647_v50  ;;  %v1019_v54 = vpop.f32.mrb[11].mxu0 }
 0x9d3   :  { %v653_v56 = vmul.f32 %v652_v53, %v647_v50 }
 0x9d5   :  { %v654_v57 = vmul.f32 0.044715, %v653_v56 }
 0x9d7   :  { %v655_v58 = vadd.f32 %v654_v57, %v647_v50 }
 0x9d9   :  { %v656_v59 = vmul.f32 0.7978846, %v655_v58 }
 0x9db   :  { %1086 = vtanh.f32 %v656_v59 }
 0x9e5   :  { %v1087_v60 = vpop.eup %1086 }
 0x9e6   :  { %v658_v36 = vadd.f32 1.0, %v1087_v60 }
 0x9e8   :  { %v659_v1 = vmul.f32 0.5, %v658_v36 }
 0x9ea   :  { %v660_v61 = vmul.f32 %v659_v1, %v647_v50 }
 0x9ec   :  { %v661_v62 = vpack.c.bf16 %v660_v61, %v660_v61 }
 0x9ee   :  { %1037 = vmatmul.mubr.bf16.vlgmr.msra.gmra.mrb[12].mxu1 %v661_v62 }
 0xac1   :  { %v724_v4 = vpop.f32.mrb[12].mxu1 }
 0xac2   :  { %v725_v0 = vadd.f32 %v724_v4, %v665_v63  ;;  %v1038_v5 = vpop.f32.mrb[13].mxu1 }
 0xac3   :  { %v727_v6 = vpop.f32.mrb[14].mxu1 }
 0xac4   :  { %v731_v17 = vrot.slane %v725_v0, 1  ;;  %v1039_v21 = vpop.f32.mrb[15].mxu1  ;;  %v734_v10 = vadd.f32 %v725_v0, %v585_v28 }
 0xac6   :  { %v735_v33 = vadd.f32 %v731_v17, %v586_v20  ;;  %v1069_v20 = vld [vmem:[%s1470_s3 + $0x2c] ss:$16 sps:$4 sm:$0xff]   ;;  %s1147_s3 = smov [#allocation5]  }
 0xac7   :  { %825 = vmatprep.subr.bf16.mxu0 %v1069_v20  ;;  %s884_s15 = sshll.u32 %s1147_s3, 4  ;;  %s885_s15 = int_to_ptr.vmem [resolvable:$true] %s884_s15 }
 0xac8   :  { %v738_v27 = vrot.slane %v735_v33, 7  ;;  %826 = vmatpush1.bf16.msra.mxu0 %v1067_v22  ;;  %s1112_s16 = scalar_lea.vmem %s885_s15, 64  ;;  %p1117_p9 = scmp.lt.s32.totalorder %s885_s15, %s885_s15 }
 0xac9   :  { %p1113_p8 = scmp.ne.s32.totalorder %s885_s15, %s1112_s16  ;;  %p1118_p10 = scmp.lt.s32.totalorder %s1112_s16, %s1112_s16 }
 0xaca   :  { %v739_v45 = vsel %vm598_vm0, %v738_v27, %v734_v10 }
 0xacb   :  { %v742_v7 = vsel %vm741_vm10, %v739_v45, 0.0  ;;  %p1119_p11 = por %p1118_p10, %p1117_p9 }
 0xacc   :  { %743 = vadd.xlane.f32.xlu1 %v742_v7 }
 0xacd   :  { %p1120_p12 = pnand %p1119_p11, %p1113_p8 }
 0xb59   :  { %v744_v39 = vpop.xlane.xlu1 %743 }
 0xb5a   :  { %v745_v8 = vmul.f32 0.03125, %v744_v39 }
 0xb5c   :  { %v747_v9 = vrot.slane %v745_v8, 1  ;;  %v750_v49 = vsub.f32 %v734_v10, %v745_v8 }
 0xb5e   :  { %v751_v3 = vsub.f32 %v735_v33, %v747_v9  ;;  %v752_v11 = vmul.f32 %v750_v49, %v750_v49 }
 0xb60   :  { %v753_v24 = vmul.f32 %v751_v3, %v751_v3 }
 0xb62   :  { %v756_v12 = vrot.slane %v753_v24, 7 }
 0xb64   :  { %v757_v15 = vsel %vm598_vm0, %v756_v12, %v752_v11 }
 0xb65   :  { %v759_v16 = vsel %vm741_vm10, %v757_v15, 0.0 }
 0xb66   :  { %760 = vadd.xlane.f32.xlu0 %v759_v16 }
 0xbf3   :  { %v761_v25 = vpop.xlane.xlu0 %760 }
 0xbf4   :  { %v762_v26 = vmul.f32 0.03125, %v761_v25 }
 0xbf6   :  { %v763_v28 = vadd.f32 1e-12, %v762_v26 }
 0xbf8   :  { %1088 = vrsqrt.f32 %v763_v28 }
 0xc02   :  { %v1089_v32 = vpop.eup %1088 }
 0xc03   :  { %v766_v35 = vrot.slane %v1089_v32, 1  ;;  %v769_v38 = vmul.f32 %v1089_v32, %v750_v49 }
 0xc05   :  { %v770_v41 = vmul.f32 %v766_v35, %v751_v3  ;;  %v775_v13 = vmul.f32 %v774_v31, %v769_v38 }
 0xc07   :  { %v776_v14 = vmul.f32 %v774_v31, %v770_v41  ;;  %v781_v42 = vadd.f32 %v780_v34, %v775_v13 }
 0xc09   :  { %v782_v43 = vadd.f32 %v780_v34, %v776_v14  ;;  %v783_v44 = vpack.c.bf16 %v781_v42, %v781_v42 }
 0xc0b   :  { %v784_v55 = vpack.c.bf16 %v782_v43, %v782_v43  ;;  %v795_v47 = vunpack.c.l.b16 %v783_v44 }
 0xc0d   :  { %v796_v46 = vunpack.c.l.b16 %v784_v55 }
 0xc0f   :  { %v797_v48 = vrot.slane %v796_v46, 7 }
 0xc11   :  { %v798_v50 = vsel %vm598_vm0, %v797_v48, %v795_v47 }
 0xc12   :  { %v799_v51 = vpack.c.b16 %v798_v50, %v798_v50 }
 0xc14   :  { %931 = vmatmul.mubr.msk.bf16.vlgmr.msra.gmra.mrb[12].mxu0 %vm248_vm2, %v799_v51 }
 0xce7   :  { %v857_v52 = vpop.f32.mrb[12].mxu0 }
 0xce8   :  { %v858_v53 = vadd.f32 %v857_v52, %v788_v2  ;;  %v859_v54 = vpop.f32.mrb[13].mxu0 }
 0xce9   :  { %v860_v56 = vadd.f32 %v859_v54, %v792_v29  ;;  %v861_v57 = vpop.f32.mrb[14].mxu0 }
 0xcea   :  { %v864_v58 = vmax.f32 %v858_v53, 0.0  ;;  %v862_v59 = vpop.f32.mrb[15].mxu0 }
 0xceb   :  { %v865_v60 = vmax.f32 %v860_v56, 0.0 }
 0xced   :  { %v868_v36 = vcombine.low %v864_v58, %v865_v60 }
 0xcef   :  { %932 = vst.sshfl [vmem:[#allocation5] sm:$0x33 pattern:$0x76325410] %v868_v36 }
 0xcf0   :  { %1123 = shalt.err (!%p1120_p12)
}
 0xcf1   :  { %s1124_s19 = scalar_lea.hbm %s1472_s5, 64 }
 0xcf2   :  { %p1125_p13 = scmp.ne.s32.totalorder %s1472_s5, %s1124_s19  ;;  %p1128_p0 = scmp.lt.u32.totalorder %s1124_s19, %s1472_s5 }
 0xcf4   :  { %p1130_p1 = pnand %p1128_p0, %p1125_p13 }
 0xcf6   :  { %1133 = shalt.err (!%p1130_p1)
}
 0xcf7   :  { %887 = dma.vmem_to_hbm [thread:$0]  %s885_s15, 64, %s1472_s5, [#allocation4]  }
 0xcf8   :  { %1136 = dma.done.wait [#allocation4], 64  }
 0xcf9   :  { %1137 = vsyncadd [#allocation4], 4294967232 }
 0xcfa   :  { %891 = vsyncpa [#allocation3], 1 }
 0xcfb   :  { %892 = vsyncpa [#allocation4], 1 }

</bundles_post_ra>
